<compile_context>
chip_gen: v7x
topology: tpu7x:2x2x1
jax: 0.10.0
libtpu: 0.0.40
codegen_flags: <defaults>
</compile_context>

<pallas_src>
import jax
import jax.numpy as jnp
import numpy as np
from jax.experimental import pallas as pl
from jax.experimental.pallas import tpu as pltpu

# Small, module-consistent stand-in shapes (real module: D=768, H=512, S~512).
B = 2        # batch
S = 8        # sequence length
D = 128      # hidden dim ("dim" in the module)
H = 128      # attention MLP hidden ("512" in the module)
C = 8        # n_classes


def _head_kernel(h_ref, w1_ref, b1_ref, w2_ref, b2_ref, wc_ref, bc_ref, out_ref):
    bt, s, d = h_ref.shape
    h = h_ref[...]                                            # (bt, S, D) f32

    # --- attention scoring MLP: Linear(D,H) -> Tanh, one flattened MXU matmul ---
    hf = h.reshape(bt * s, d)                                 # layout no-op (S%8==0, D%128==0)
    a = jnp.tanh(
        jnp.dot(hf, w1_ref[...], preferred_element_type=jnp.float32)
        + b1_ref[...])                                        # (bt*S, H)
    a = a.reshape(bt, s, w1_ref.shape[1])                     # (bt, S, H)

    # --- Linear(H,1) as VPU multiply + lane reduce (avoid N=1 MXU matmul) ---
    scores = jnp.sum(a * w2_ref[...], axis=-1) + b2_ref[0, 0]  # (bt, S), lane-dense over S

    # --- softmax over the sequence axis (torch dim=1), numerically stable ---
    m = jnp.max(scores, axis=-1, keepdims=True)
    e = jnp.exp(scores - m)
    attn = e / jnp.sum(e, axis=-1, keepdims=True)             # (bt, S)

    # --- context_vector = sum(weights * h, dim=1) ---
    ctx = jnp.sum(attn[..., None] * h, axis=1)                # (bt, D)

    # --- fused classifier heads: one lane-dense (D, CP) matmul, single unmasked store ---
    out_ref[...] = (jnp.dot(ctx, wc_ref[...], preferred_element_type=jnp.float32)
                    + bc_ref[...])                            # (bt, CP)


def mlmodel_lite_head(h, params, *, bt=None):
    """h: (B, S, D) f32 last-layer hidden states; params: dict of weights."""
    b, s, d = h.shape
    hh = params['w1'].shape[1]
    c = params['wp'].shape[1]
    if bt is None:
        bt = b                      # small-shape default; use a multiple of 8 at real shapes
    assert b % bt == 0

    # Fuse the three heads into one lane-dense weight/bias, zero-padded to 128 lanes.
    cp = max(128, ((3 * c + 127) // 128) * 128)
    wc = jnp.pad(jnp.concatenate([params['wp'], params['wn'], params['wu']], axis=1),
                 ((0, 0), (0, cp - 3 * c)))                   # (D, CP)
    bc = jnp.pad(jnp.concatenate([params['bp'], params['bn'], params['bu']], axis=1),
                 ((0, 0), (0, cp - 3 * c)))                   # (1, CP)
    w2_row = params['w2'].T                                   # (1, H) row for the VPU reduce
    b2 = params['b2'].reshape(1, 1)                           # scalar -> SMEM

    out = pl.pallas_call(
        _head_kernel,
        out_shape=jax.ShapeDtypeStruct((b, cp), jnp.float32),
        grid=(b // bt,),
        in_specs=[
            pl.BlockSpec((bt, s, d), lambda i: (i, 0, 0)),    # hidden states (batch-tiled)
            pl.BlockSpec((d, hh), lambda i: (0, 0)),          # attention Linear 1 weight
            pl.BlockSpec((1, hh), lambda i: (0, 0)),          # attention Linear 1 bias
            pl.BlockSpec((1, hh), lambda i: (0, 0)),          # attention Linear 2 weight (row)
            pl.BlockSpec(memory_space=pltpu.MemorySpace.SMEM),  # attention Linear 2 bias (scalar)
            pl.BlockSpec((d, cp), lambda i: (0, 0)),          # fused classifier weight
            pl.BlockSpec((1, cp), lambda i: (0, 0)),          # fused classifier bias
        ],
        out_specs=pl.BlockSpec((bt, cp), lambda i: (i, 0)),
        compiler_params=pltpu.CompilerParams(
            dimension_semantics=("parallel",),
            vmem_limit_bytes=32 * 1024 * 1024),
    )(h, params['w1'], params['b1'], w2_row, b2, wc, bc)

    return {'positive': out[:, 0:c],
            'negative': out[:, c:2 * c],
            'neutral':  out[:, 2 * c:3 * c]}


def _xavier(key, fan_in, fan_out):
    # matches torch.nn.init.xavier_uniform_ scaling
    limit = float(np.sqrt(6.0 / (fan_in + fan_out)))
    return jax.random.uniform(key, (fan_in, fan_out), jnp.float32, -limit, limit)


def make_params(key):
    ks = jax.random.split(key, 8)
    return {
        'w1': _xavier(ks[0], D, H), 'b1': jnp.zeros((1, H), jnp.float32),
        'w2': _xavier(ks[1], H, 1), 'b2': jnp.zeros((1, 1), jnp.float32),
        'wp': _xavier(ks[2], D, C), 'bp': jnp.zeros((1, C), jnp.float32),
        'wn': _xavier(ks[3], D, C), 'bn': jnp.zeros((1, C), jnp.float32),
        'wu': _xavier(ks[4], D, C), 'bu': jnp.zeros((1, C), jnp.float32),
    }


def reference(h, p):
    a = jnp.tanh(jnp.einsum('bsd,dh->bsh', h, p['w1']) + p['b1'])
    s = jnp.einsum('bsh,hk->bsk', a, p['w2']) + p['b2']
    w = jax.nn.softmax(s, axis=1)
    ctx = jnp.sum(w * h, axis=1)
    return {'positive': ctx @ p['wp'] + p['bp'],
            'negative': ctx @ p['wn'] + p['bn'],
            'neutral':  ctx @ p['wu'] + p['bu']}


if __name__ == "__main__":
    key = jax.random.PRNGKey(0)
    k_h, k_p = jax.random.split(key)
    h = jax.random.normal(k_h, (B, S, D), jnp.float32)   # stand-in BERT hidden states
    params = make_params(k_p)

    out = mlmodel_lite_head(h, params)
    jax.block_until_ready(out)

    ref = reference(h, params)
    for k in ('positive', 'negative', 'neutral'):
        np.testing.assert_allclose(np.asarray(out[k]), np.asarray(ref[k]),
                                   rtol=1e-5, atol=1e-5)

    print("KERNEL_OK")
</pallas_src>

<mosaic_0001>
module attributes {stable_mosaic.version = 11 : i64} {
  func.func @_head_kernel(%arg0: i32, %arg1: memref<2x8x128xf32, #tpu.memory_space<vmem>>, %arg2: memref<128x128xf32, #tpu.memory_space<vmem>>, %arg3: memref<1x128xf32, #tpu.memory_space<vmem>>, %arg4: memref<1x128xf32, #tpu.memory_space<vmem>>, %arg5: memref<1x1xf32, #tpu.memory_space<smem>>, %arg6: memref<128x128xf32, #tpu.memory_space<vmem>>, %arg7: memref<1x128xf32, #tpu.memory_space<vmem>>, %arg8: memref<2x128xf32, #tpu.memory_space<vmem>>) attributes {dimension_semantics = [#tpu.dimension_semantics<parallel>], iteration_bounds = array<i64: 1>, scalar_prefetch = 0 : i64, scratch_operands = 0 : i64, tpu.core_type = #tpu.core_type<tc>, window_params = [{transform_indices = @transform_0, window_bounds = array<i64: 2, 8, 128>}, {pipeline_mode = #tpu.pipeline_mode<synchronous>, transform_indices = @transform_1, window_bounds = array<i64: 128, 128>}, {pipeline_mode = #tpu.pipeline_mode<synchronous>, transform_indices = @transform_2, window_bounds = array<i64: 1, 128>}, {pipeline_mode = #tpu.pipeline_mode<synchronous>, transform_indices = @transform_3, window_bounds = array<i64: 1, 128>}, {transform_indices = @transform_4, window_bounds = array<i64: 1, 1>}, {pipeline_mode = #tpu.pipeline_mode<synchronous>, transform_indices = @transform_5, window_bounds = array<i64: 128, 128>}, {pipeline_mode = #tpu.pipeline_mode<synchronous>, transform_indices = @transform_6, window_bounds = array<i64: 1, 128>}, {transform_indices = @transform_7, window_bounds = array<i64: 2, 128>}]} {
    %c0 = arith.constant 0 : index
    %c0_0 = arith.constant 0 : index
    %c0_1 = arith.constant 0 : index
    %0 = vector.load %arg1[%c0, %c0_0, %c0_1] : memref<2x8x128xf32, #tpu.memory_space<vmem>>, vector<2x8x128xf32>
    %1 = vector.shape_cast %0 : vector<2x8x128xf32> to vector<16x128xf32>
    %c0_2 = arith.constant 0 : index
    %c0_3 = arith.constant 0 : index
    %2 = vector.load %arg2[%c0_2, %c0_3] : memref<128x128xf32, #tpu.memory_space<vmem>>, vector<128x128xf32>
    %cst = arith.constant dense<0.000000e+00> : vector<16x128xf32>
    %3 = tpu.matmul %1, %2, %cst {dimension_numbers = #tpu.dot_dimension_numbers<[1], [0], [0], [1], [0, 0, 1, 1], [], []>} : vector<16x128xf32>, vector<128x128xf32>, vector<16x128xf32> -> vector<16x128xf32>
    %c0_4 = arith.constant 0 : index
    %c0_5 = arith.constant 0 : index
    %4 = vector.load %arg3[%c0_4, %c0_5] : memref<1x128xf32, #tpu.memory_space<vmem>>, vector<1x128xf32>
    %5 = vector.broadcast %4 : vector<1x128xf32> to vector<16x128xf32>
    %6 = arith.addf %3, %5 : vector<16x128xf32>
    %7 = math.tanh %6 : vector<16x128xf32>
    %8 = vector.shape_cast %7 : vector<16x128xf32> to vector<2x8x128xf32>
    %c0_6 = arith.constant 0 : index
    %c0_7 = arith.constant 0 : index
    %9 = vector.load %arg4[%c0_6, %c0_7] : memref<1x128xf32, #tpu.memory_space<vmem>>, vector<1x128xf32>
    %10 = vector.shape_cast %9 : vector<1x128xf32> to vector<1x1x128xf32>
    %11 = vector.broadcast %10 : vector<1x1x128xf32> to vector<2x8x128xf32>
    %12 = arith.mulf %8, %11 : vector<2x8x128xf32>
    %cst_8 = arith.constant dense<0.000000e+00> : vector<2x8xf32>
    %13 = vector.multi_reduction <add>, %12, %cst_8 [2] : vector<2x8x128xf32> to vector<2x8xf32>
    %c0_9 = arith.constant 0 : index
    %c0_10 = arith.constant 0 : index
    %14 = memref.load %arg5[%c0_9, %c0_10] : memref<1x1xf32, #tpu.memory_space<smem>>
    %15 = vector.broadcast %14 : f32 to vector<2x8xf32>
    %16 = arith.addf %13, %15 : vector<2x8xf32>
    %cst_11 = arith.constant dense<0xFF800000> : vector<2xf32>
    %17 = vector.multi_reduction <maximumf>, %16, %cst_11 [1] : vector<2x8xf32> to vector<2xf32>
    %18 = vector.shape_cast %17 : vector<2xf32> to vector<2x1xf32>
    %19 = vector.broadcast %18 : vector<2x1xf32> to vector<2x8xf32>
    %20 = arith.subf %16, %19 : vector<2x8xf32>
    %21 = math.exp %20 : vector<2x8xf32>
    %cst_12 = arith.constant dense<0.000000e+00> : vector<2xf32>
    %22 = vector.multi_reduction <add>, %21, %cst_12 [1] : vector<2x8xf32> to vector<2xf32>
    %23 = vector.shape_cast %22 : vector<2xf32> to vector<2x1xf32>
    %24 = vector.broadcast %23 : vector<2x1xf32> to vector<2x8xf32>
    %25 = arith.divf %21, %24 : vector<2x8xf32>
    %26 = vector.shape_cast %25 : vector<2x8xf32> to vector<2x8x1xf32>
    %27 = vector.broadcast %26 : vector<2x8x1xf32> to vector<2x8x128xf32>
    %28 = arith.mulf %27, %0 : vector<2x8x128xf32>
    %cst_13 = arith.constant dense<0.000000e+00> : vector<2x128xf32>
    %29 = vector.multi_reduction <add>, %28, %cst_13 [1] : vector<2x8x128xf32> to vector<2x128xf32>
    %c0_14 = arith.constant 0 : index
    %c0_15 = arith.constant 0 : index
    %30 = vector.load %arg6[%c0_14, %c0_15] : memref<128x128xf32, #tpu.memory_space<vmem>>, vector<128x128xf32>
    %cst_16 = arith.constant dense<0.000000e+00> : vector<2x128xf32>
    %31 = tpu.matmul %29, %30, %cst_16 {dimension_numbers = #tpu.dot_dimension_numbers<[1], [0], [0], [1], [0, 0, 1, 1], [], []>} : vector<2x128xf32>, vector<128x128xf32>, vector<2x128xf32> -> vector<2x128xf32>
    %c0_17 = arith.constant 0 : index
    %c0_18 = arith.constant 0 : index
    %32 = vector.load %arg7[%c0_17, %c0_18] : memref<1x128xf32, #tpu.memory_space<vmem>>, vector<1x128xf32>
    %33 = vector.broadcast %32 : vector<1x128xf32> to vector<2x128xf32>
    %34 = arith.addf %31, %33 : vector<2x128xf32>
    %c0_19 = arith.constant 0 : index
    %c0_20 = arith.constant 0 : index
    %35 = vector.load %arg8[%c0_19, %c0_20] : memref<2x128xf32, #tpu.memory_space<vmem>>, vector<2x128xf32>
    tpu.vector_store %arg8[%c0_19, %c0_20], %34 {strides = array<i32>} : memref<2x128xf32, #tpu.memory_space<vmem>>, vector<2x128xf32>,
    return
  }
  func.func @transform_0(%arg0: i32) -> (i32, i32, i32) {
    %c0_i32 = arith.constant 0 : i32
    %c0_i32_0 = arith.constant 0 : i32
    %c0_i32_1 = arith.constant 0 : i32
    return %arg0, %c0_i32, %c0_i32_0 : i32, i32, i32
  }
  func.func @transform_1(%arg0: i32) -> (i32, i32) {
    %c0_i32 = arith.constant 0 : i32
    %c0_i32_0 = arith.constant 0 : i32
    %c0_i32_1 = arith.constant 0 : i32
    return %c0_i32, %c0_i32_0 : i32, i32
  }
  func.func @transform_2(%arg0: i32) -> (i32, i32) {
    %c0_i32 = arith.constant 0 : i32
    %c0_i32_0 = arith.constant 0 : i32
    %c0_i32_1 = arith.constant 0 : i32
    return %c0_i32, %c0_i32_0 : i32, i32
  }
  func.func @transform_3(%arg0: i32) -> (i32, i32) {
    %c0_i32 = arith.constant 0 : i32
    %c0_i32_0 = arith.constant 0 : i32
    %c0_i32_1 = arith.constant 0 : i32
    return %c0_i32, %c0_i32_0 : i32, i32
  }
  func.func @transform_4(%arg0: i32) -> (i32, i32) {
    %c0_i32 = arith.constant 0 : i32
    %c0_i32_0 = arith.constant 0 : i32
    %c0_i32_1 = arith.constant 0 : i32
    return %c0_i32, %c0_i32_0 : i32, i32
  }
  func.func @transform_5(%arg0: i32) -> (i32, i32) {
    %c0_i32 = arith.constant 0 : i32
    %c0_i32_0 = arith.constant 0 : i32
    %c0_i32_1 = arith.constant 0 : i32
    return %c0_i32, %c0_i32_0 : i32, i32
  }
  func.func @transform_6(%arg0: i32) -> (i32, i32) {
    %c0_i32 = arith.constant 0 : i32
    %c0_i32_0 = arith.constant 0 : i32
    %c0_i32_1 = arith.constant 0 : i32
    return %c0_i32, %c0_i32_0 : i32, i32
  }
  func.func @transform_7(%arg0: i32) -> (i32, i32) {
    %c0_i32 = arith.constant 0 : i32
    %c0_i32_0 = arith.constant 0 : i32
    return %arg0, %c0_i32 : i32, i32
  }
}

</mosaic_0001>

<bundles_post_ra>
// kernel: tpu_custom_call.1
= control target key start
LH: loop header
LB: loop body
LE: loop exit
PB: predicated region body
PF: predicated region fallthrough
CT: control target
= control target key end

     0   :  { %13 = vsyncpa [#allocation4], 0  ;;  %s819_s0 = inlined_call_operand.hbm [shape: f32[2,8,128], index: 0, kind: input, shape index: {}]   ;;  %s820_s1 = inlined_call_operand.hbm [shape: f32[128,128], index: 1, kind: input, shape index: {}]   ;;  %s821_s2 = inlined_call_operand.vmem [shape: f32[1,128], index: 2, kind: input, shape index: {}]   ;;  %s822_s3 = inlined_call_operand.vmem [shape: f32[1,128], index: 3, kind: input, shape index: {}]   ;;  %s823_s4 = inlined_call_operand.<no memory space> [shape: f32[1,1], index: 4, kind: input, shape index: {}]   ;;  %s824_s5 = inlined_call_operand.hbm [shape: f32[128,128], index: 5, kind: input, shape index: {}]   ;;  %s825_s6 = inlined_call_operand.vmem [shape: f32[1,128], index: 6, kind: input, shape index: {}]   ;;  %s826_s7 = inlined_call_operand.hbm [shape: f32[2,128], index: 7, kind: output, shape index: {}]  }
   0x1   :  { %14 = vsyncpa [#allocation7], 0 }
   0x2   :  { %15 = vsyncpa [#allocation5], 0  ;;  %s680_s24 = smov [#allocation6]   ;;  %s681_s26 = smov [#allocation3]  }
   0x3   :  { %s33_s25 = sshll.u32 %s680_s24, 4  ;;  %s21_s27 = sshll.u32 %s681_s26, 4  ;;  %s34_s25 = int_to_ptr.vmem [resolvable:$true] %s33_s25  ;;  %s730_s27 = int_to_ptr.vmem [resolvable:$true] %s21_s27 }
   0x4   :  { %s586_s30 = scalar_lea.hbm %s820_s1, 2048 }
   0x5   :  { %p587_p0 = scmp.ne.s32.totalorder %s820_s1, %s586_s30  ;;  %p590_p1 = scmp.lt.u32.totalorder %s586_s30, %s820_s1 }
   0x7   :  { %p592_p2 = pnand %p590_p1, %p587_p0 }
   0x9   :  { %595 = shalt.err (!%p592_p2)
}
   0xa   :  { %s596_s12 = scalar_lea.vmem %s34_s25, 2048  ;;  %p601_p4 = scmp.lt.s32.totalorder %s34_s25, %s34_s25 }
   0xb   :  { %p597_p3 = scmp.ne.s32.totalorder %s34_s25, %s596_s12  ;;  %p602_p5 = scmp.lt.s32.totalorder %s596_s12, %s596_s12 }
   0xd   :  { %p603_p6 = por %p602_p5, %p601_p4 }
   0xf   :  { %p604_p7 = pnand %p603_p6, %p597_p3 }
  0x11   :  { %607 = shalt.err (!%p604_p7)
}
  0x12   :  { %s682_s13 = smov 128   ;;  %s683_s14 = smov 8  }
  0x13   :  { %39 = dma.hbm_to_vmem [thread:$0]  %s820_s1, 2048, %s34_s25, [#allocation7], %s682_s13, %s682_s13, %s683_s14  }
  0x14   :  { %s608_s19 = scalar_lea.hbm %s819_s0, 256 }
  0x15   :  { %p609_p8 = scmp.ne.s32.totalorder %s819_s0, %s608_s19  ;;  %p612_p9 = scmp.lt.u32.totalorder %s608_s19, %s819_s0 }
  0x17   :  { %p614_p10 = pnand %p612_p9, %p609_p8 }
  0x19   :  { %617 = shalt.err (!%p614_p10)
}
  0x1a   :  { %s618_s24 = scalar_lea.vmem %s730_s27, 256  ;;  %p623_p12 = scmp.lt.s32.totalorder %s730_s27, %s730_s27 }
  0x1b   :  { %p619_p11 = scmp.ne.s32.totalorder %s730_s27, %s618_s24  ;;  %p624_p13 = scmp.lt.s32.totalorder %s618_s24, %s618_s24 }
  0x1d   :  { %p625_p0 = por %p624_p13, %p623_p12 }
  0x1f   :  { %p626_p1 = pnand %p625_p0, %p619_p11 }
  0x21   :  { %629 = shalt.err (!%p626_p1)
}
  0x22   :  { %27 = dma.hbm_to_vmem [thread:$0]  %s819_s0, 256, %s730_s27, [#allocation4], %s682_s13, %s682_s13, %s683_s14  }
  0x23   :  { %s684_s26 = smov [#allocation8]   ;;  %s630_s8 = scalar_lea.hbm %s824_s5, 2048 }
  0x24   :  { %s51_s28 = sshll.u32 %s684_s26, 4  ;;  %p631_p2 = scmp.ne.s32.totalorder %s824_s5, %s630_s8  ;;  %s52_s28 = int_to_ptr.vmem [resolvable:$true] %s51_s28 }
  0x25   :  { %p634_p3 = scmp.lt.u32.totalorder %s630_s8, %s824_s5 }
  0x27   :  { %p636_p4 = pnand %p634_p3, %p631_p2 }
  0x29   :  { %639 = shalt.err (!%p636_p4)
}
  0x2a   :  { %s640_s15 = scalar_lea.vmem %s52_s28, 2048  ;;  %p645_p6 = scmp.lt.s32.totalorder %s52_s28, %s52_s28 }
  0x2b   :  { %p641_p5 = scmp.ne.s32.totalorder %s52_s28, %s640_s15  ;;  %p646_p7 = scmp.lt.s32.totalorder %s640_s15, %s640_s15 }
  0x2d   :  { %p647_p8 = por %p646_p7, %p645_p6 }
  0x2f   :  { %p648_p9 = pnand %p647_p8, %p641_p5 }
  0x31   :  { %651 = shalt.err (!%p648_p9)
}
  0x32   :  { %57 = dma.hbm_to_vmem [thread:$0]  %s824_s5, 2048, %s52_s28, [#allocation7], %s682_s13, %s682_s13, %s683_s14  }
  0x33   :  { %674 = dma.done.wait [#allocation4], 256  }
  0x34   :  { %675 = vsyncadd [#allocation4], 4294967040 }
  0x35   :  { %676 = dma.done.wait [#allocation7], 4096  }
  0x36   :  { %677 = vsyncadd [#allocation7], 4294963200  ;;  %v71_v0 = vld [vmem:[#allocation6] sm:$0xff]  ;;  %v72_v1 = vld [vmem:[#allocation6 + $0x8] sm:$0xff]  ;;  %v190_v36 = vlaneseq  ;;  %v185_v39 = vstv %s823_s4  ;;  %vm200_vm0 = vcmask 1041409   ;;  %vm203_vm1 = vcmask 58368  }
  0x37   :  { %v73_v2 = vld [vmem:[#allocation6 + $0x10] sm:$0xff]  ;;  %v506_v3 = vpack.c.bf16 %v72_v1, %v71_v0  ;;  %v74_v4 = vld [vmem:[#allocation6 + $0x18] sm:$0xff]  ;;  %v75_v6 = vld [vmem:[#allocation6 + $0x20] sm:$0xff]  ;;  %v685_v49 = vmov 0   ;;  %vm687_vm2 = vmmov 0   ;;  %s689_s18 = smov [#allocation9]  }
  0x38   :  { %v510_v5 = vpack.c.bf16 %v74_v4, %v73_v2  ;;  %v76_v7 = vld [vmem:[#allocation6 + $0x28] sm:$0xff]  ;;  %v782_v9 = vld [vmem:[#allocation3] sm:$0xff]  ;;  %v78_v11 = vld [vmem:[#allocation6 + $0x38] sm:$0xff]  ;;  %v191_v37 = vand.u32 127, %v190_v36  ;;  %v193_v38 = vshrl.u32 %v190_v36, 7  ;;  %573 = vset.pattern.permute.xlu0 %v685_v49  ;;  %572 = vset.pattern.permute.xlu1 %v685_v49  ;;  %s388_s19 = sshll.u32 %s689_s18, 4  ;;  %s389_s19 = int_to_ptr.vmem [resolvable:$true] %s388_s19 }
  0x39   :  { %507 = vmatprep.subr.bf16.mxu0 %v506_v3  ;;  %v514_v8 = vpack.c.bf16 %v76_v7, %v75_v6  ;;  %v77_v10 = vld [vmem:[#allocation6 + $0x30] sm:$0xff]  ;;  %468 = vmatprep.mubr.f32.mxu0 %v782_v9  ;;  %v79_v13 = vld [vmem:[#allocation6 + $0x40] sm:$0xff]  ;;  %v80_v14 = vld [vmem:[#allocation6 + $0x48] sm:$0xff]  ;;  %v686_v6 = vmov 0.0|0.0   ;;  %s652_s20 = scalar_lea.vmem %s389_s19, 32  ;;  %p657_p11 = scmp.lt.s32.totalorder %s389_s19, %s389_s19 }
  0x3a   :  { %509 = vmatpush3.bf16.msra.mxu0 %v506_v3  ;;  %v518_v12 = vpack.c.bf16 %v78_v11, %v77_v10  ;;  %v522_v15 = vpack.c.bf16 %v80_v14, %v79_v13  ;;  %v81_v16 = vld [vmem:[#allocation6 + $0x50] sm:$0xff]  ;;  %v82_v17 = vld [vmem:[#allocation6 + $0x58] sm:$0xff]  ;;  %v83_v19 = vld [vmem:[#allocation6 + $0x60] sm:$0xff]  ;;  %v194_v41 = vsub.s32 %v191_v37, %v193_v38  ;;  %v210_v50 = vsub.s32 0, %v193_v38  ;;  %538 = vmatprep.subr.bf16.mxu1 %v686_v6  ;;  %p653_p10 = scmp.ne.s32.totalorder %s389_s19, %s652_s20  ;;  %p658_p12 = scmp.lt.s32.totalorder %s652_s20, %s652_s20 }
  0x3b   :  { %511 = vmatprep.subr.bf16.mxu0 %v510_v5  ;;  %v526_v18 = vpack.c.bf16 %v82_v17, %v81_v16  ;;  %v84_v20 = vld [vmem:[#allocation6 + $0x68] sm:$0xff]  ;;  %v85_v22 = vld [vmem:[#allocation6 + $0x70] sm:$0xff]  ;;  %v86_v23 = vld [vmem:[#allocation6 + $0x78] sm:$0xff]  ;;  %v214_v51 = vsub.s32 1, %v193_v38  ;;  %v688_v37 = vmov 0.0  }
  0x3c   :  { %v530_v21 = vpack.c.bf16 %v84_v20, %v83_v19  ;;  %v534_v24 = vpack.c.bf16 %v86_v23, %v85_v22  ;;  %v785_v25 = vld [vmem:[#allocation3 + $0x8] sm:$0xff]  ;;  %v398_v26 = vld [vmem:[%s821_s2] ss:$0 sm:$0xff]  ;;  %v284_v3 = vld [vmem:[#allocation8] sm:$0xff]  ;;  %503 = vmatprep.mubr.msk.f32.mxu1 %vm687_vm2, %v688_v37  ;;  %p659_p13 = por %p658_p12, %p657_p11 }
  0x3d   :  { %v399_v31 = vld [vmem:[%s822_s3] ss:$0 sm:$0xff]  ;;  %v285_v4 = vld [vmem:[#allocation8 + $0x8] sm:$0xff]  ;;  %v288_v11 = vld [vmem:[#allocation8 + $0x20] sm:$0xff] }
  0x3e   :  { %513 = vmatpush3.bf16.msra.mxu0 %v510_v5  ;;  %v286_v5 = vld [vmem:[#allocation8 + $0x10] sm:$0xff]  ;;  %v539_v7 = vpack.c.bf16 %v285_v4, %v284_v3  ;;  %v291_v20 = vld [vmem:[#allocation8 + $0x38] sm:$0xff]  ;;  %p660_p0 = pnand %p659_p13, %p653_p10 }
  0x3f   :  { %515 = vmatprep.subr.bf16.mxu0 %v514_v8  ;;  %v290_v19 = vld [vmem:[#allocation8 + $0x30] sm:$0xff] }
  0x40   :  { %540 = vmatpush3.bf16.msra.mxu1 %v539_v7  ;;  %v548_v22 = vpack.c.bf16 %v291_v20, %v290_v19 }
  0x41   :  { %541 = vmatprep.subr.bf16.mxu1 %v686_v6 }
  0x42   :  { %517 = vmatpush3.bf16.msra.mxu0 %v514_v8  ;;  %v287_v8 = vld [vmem:[#allocation8 + $0x18] sm:$0xff] }
  0x43   :  { %519 = vmatprep.subr.bf16.mxu0 %v518_v12  ;;  %v542_v10 = vpack.c.bf16 %v287_v8, %v286_v5 }
  0x45   :  { %543 = vmatpush3.bf16.msra.mxu1 %v542_v10 }
  0x46   :  { %521 = vmatpush3.bf16.msra.mxu0 %v518_v12  ;;  %v289_v12 = vld [vmem:[#allocation8 + $0x28] sm:$0xff]  ;;  %544 = vmatprep.subr.bf16.mxu1 %v686_v6 }
  0x47   :  { %523 = vmatprep.subr.bf16.mxu0 %v522_v15  ;;  %v545_v13 = vpack.c.bf16 %v289_v12, %v288_v11 }
  0x49   :  { %546 = vmatpush3.bf16.msra.mxu1 %v545_v13 }
  0x4a   :  { %525 = vmatpush3.bf16.msra.mxu0 %v522_v15  ;;  %547 = vmatprep.subr.bf16.mxu1 %v686_v6 }
  0x4b   :  { %527 = vmatprep.subr.bf16.mxu0 %v526_v18 }
  0x4d   :  { %549 = vmatpush3.bf16.msra.mxu1 %v548_v22 }
  0x4e   :  { %529 = vmatpush3.bf16.msra.mxu0 %v526_v18  ;;  %550 = vmatprep.subr.bf16.mxu1 %v686_v6 }
  0x4f   :  { %531 = vmatprep.subr.bf16.mxu0 %v530_v21 }
  0x52   :  { %533 = vmatpush3.bf16.msra.mxu0 %v530_v21 }
  0x53   :  { %535 = vmatprep.subr.bf16.mxu0 %v534_v24 }
  0x56   :  { %537 = vmatpush3.bf16.msra.mxu0 %v534_v24  ;;  %v292_v24 = vld [vmem:[#allocation8 + $0x40] sm:$0xff] }
  0x59   :  { %469 = vmatmul.mubr.f32.vlgmr.msra.gmra.mrb[0].mxu0 %v785_v25 }
 0x12c   :  { %v470_v27 = vpop.f32.mrb[0].mxu0 }
 0x12d   :  { %v160_v28 = vpop.f32.mrb[1].mxu0  ;;  %v166_v29 = vadd.f32 %v470_v27, %v398_v26 }
 0x12e   :  { %v161_v30 = vadd.f32 %v398_v26, %v160_v28  ;;  %v293_v26 = vld [vmem:[#allocation8 + $0x48] sm:$0xff]  ;;  %v294_v28 = vld [vmem:[#allocation8 + $0x50] sm:$0xff] }
 0x12f   :  { %v551_v27 = vpack.c.bf16 %v293_v26, %v292_v24 }
 0x130   :  { %574 = vtanh.f32 %v161_v30 }
 0x131   :  { %576 = vtanh.f32 %v166_v29  ;;  %552 = vmatpush3.bf16.msra.mxu1 %v551_v27  ;;  %v295_v29 = vld [vmem:[#allocation8 + $0x58] sm:$0xff] }
 0x132   :  { %553 = vmatprep.subr.bf16.mxu1 %v686_v6  ;;  %v554_v30 = vpack.c.bf16 %v295_v29, %v294_v28 }
 0x135   :  { %555 = vmatpush3.bf16.msra.mxu1 %v554_v30 }
 0x136   :  { %556 = vmatprep.subr.bf16.mxu1 %v686_v6 }
 0x13a   :  { %v575_v32 = vpop.eup %574 }
 0x13b   :  { %v178_v33 = vmul.f32 %v575_v32, %v399_v31  ;;  %v577_v34 = vpop.eup %576  ;;  %v297_v32 = vld [vmem:[#allocation8 + $0x68] sm:$0xff] }
 0x13c   :  { %v179_v35 = vmul.f32 %v577_v34, %v399_v31  ;;  %v296_v31 = vld [vmem:[#allocation8 + $0x60] sm:$0xff]  ;;  %v298_v34 = vld [vmem:[#allocation8 + $0x70] sm:$0xff] }
 0x13d   :  { %180 = vadd.xlane.f32.xlu0 %v178_v33  ;;  %v557_v33 = vpack.c.bf16 %v297_v32, %v296_v31 }
 0x13f   :  { %558 = vmatpush3.bf16.msra.mxu1 %v557_v33 }
 0x140   :  { %559 = vmatprep.subr.bf16.mxu1 %v686_v6 }
 0x141   :  { %182 = vadd.xlane.f32.xlu0 %v179_v35  ;;  %v299_v35 = vld [vmem:[#allocation8 + $0x78] sm:$0xff] }
 0x142   :  { %v560_v36 = vpack.c.bf16 %v299_v35, %v298_v34 }
 0x144   :  { %561 = vmatpush3.bf16.msra.mxu1 %v560_v36 }
 0x1ca   :  { %v181_v40 = vpop.xlane.xlu0 %180 }
 0x1cb   :  { %v186_v42 = vadd.f32 %v185_v39, %v181_v40 }
 0x1cd   :  { %v195_v45 = vrot.slane %v186_v42, %v194_v41 }
 0x1ce   :  { %v183_v43 = vpop.xlane.xlu0 %182 }
 0x1cf   :  { %v187_v44 = vadd.f32 %v185_v39, %v183_v43 }
 0x1d1   :  { %v199_v46 = vrot.slane %v187_v44, %v194_v41 }
 0x1d3   :  { %v201_v47 = vsel %vm200_vm0, %v199_v46, %v195_v45 }
 0x1d4   :  { %v204_v48 = vsel %vm203_vm1, %v201_v47, -inf }
 0x1d5   :  { %205 = vmax.xlane.f32.xlu1 %v204_v48 }
 0x262   :  { %v206_v52 = vpop.xlane.xlu1 %205 }
 0x263   :  { %v211_v53 = vrot.slane %v206_v52, %v210_v50  ;;  %v215_v54 = vrot.slane %v206_v52, %v214_v51 }
 0x265   :  { %v218_v55 = vsub.f32 %v186_v42, %v211_v53  ;;  %v219_v56 = vsub.f32 %v187_v44, %v215_v54 }
 0x267   :  { %v220_v57 = vmul.f32 1.442695, %v218_v55  ;;  %v222_v58 = vmul.f32 1.442695, %v219_v56 }
 0x269   :  { %578 = vpow2.f32 %v220_v57 }
 0x26a   :  { %580 = vpow2.f32 %v222_v58 }
 0x273   :  { %v579_v59 = vpop.eup %578 }
 0x274   :  { %v581_v60 = vpop.eup %580  ;;  %227 = vperm.xlu1 %572, %v579_v59  }
 0x275   :  { %230 = vperm.xlu0 %573, %v581_v60  }
 0x2f3   :  { %v228_v61 = vpop.permute.xlu1 %227 }
 0x2f4   :  { %v231_v62 = vpop.permute.xlu0 %230  ;;  %v235_v63 = vrot.slane %v228_v61, %v194_v41 }
 0x2f5   :  { %v239_v0 = vrot.slane %v231_v62, %v194_v41 }
 0x2f7   :  { %v240_v1 = vsel %vm200_vm0, %v239_v0, %v235_v63 }
 0x2f8   :  { %v242_v2 = vsel %vm203_vm1, %v240_v1, 0.0 }
 0x2f9   :  { %243 = vadd.xlane.f32.xlu1 %v242_v2 }
 0x386   :  { %v244_v14 = vpop.xlane.xlu1 %243 }
 0x387   :  { %v249_v15 = vrot.slane %v244_v14, %v210_v50  ;;  %v253_v16 = vrot.slane %v244_v14, %v214_v51 }
 0x389   :  { %582 = vrcp.f32 %v249_v15 }
 0x38a   :  { %584 = vrcp.f32 %v253_v16 }
 0x393   :  { %v583_v17 = vpop.eup %582 }
 0x394   :  { %v257_v18 = vmul.f32 %v583_v17, %v579_v59  ;;  %v585_v21 = vpop.eup %584 }
 0x395   :  { %v259_v23 = vmul.f32 %v585_v21, %v581_v60 }
 0x396   :  { %262 = vperm.xlu0 %573, %v257_v18  }
 0x39a   :  { %267 = vperm.xlu0 %573, %v259_v23  }
 0x415   :  { %v263_v38 = vpop.permute.xlu0 %262 }
 0x416   :  { %v270_v39 = vmul.f32 %v263_v38, %v782_v9  ;;  %v400_v9 = vld [vmem:[%s825_s6] ss:$0 sm:$0xff] }
 0x418   :  { %v272_v40 = vrot.slane %v270_v39, 4 }
 0x419   :  { %v268_v41 = vpop.permute.xlu0 %267 }
 0x41a   :  { %v273_v42 = vadd.f32 %v272_v40, %v270_v39  ;;  %v271_v43 = vmul.f32 %v268_v41, %v785_v25 }
 0x41c   :  { %v274_v44 = vrot.slane %v273_v42, 2  ;;  %v278_v45 = vrot.slane %v271_v43, 4 }
 0x41e   :  { %v275_v46 = vadd.f32 %v274_v44, %v273_v42  ;;  %v279_v47 = vadd.f32 %v278_v45, %v271_v43 }
 0x420   :  { %v280_v48 = vrot.slane %v279_v47, 2  ;;  %v276_v49 = vrot.slane %v275_v46, 1 }
 0x422   :  { %v281_v50 = vadd.f32 %v280_v48, %v279_v47  ;;  %v277_v52 = vadd.f32 %v276_v49, %v275_v46 }
 0x424   :  { %v282_v51 = vrot.slane %v281_v50, 1 }
 0x426   :  { %v283_v53 = vadd.f32 %v282_v51, %v281_v50 }
 0x428   :  { %v309_v54 = vsel %vm200_vm0, %v283_v53, %v277_v52 }
 0x429   :  { %504 = vmatmul.mubr.f32.vlgmr.msra.gmra.mrb[0].mxu1 %v309_v54 }
 0x4fc   :  { %v377_v25 = vpop.f32.mrb[0].mxu1 }
 0x4fd   :  { %v378_v55 = vadd.f32 %v400_v9, %v377_v25  ;;  %v505_v56 = vpop.f32.mrb[1].mxu1 }
 0x4ff   :  { %381 = vst [vmem:[#allocation9] sm:$0x3] %v378_v55 }
 0x500   :  { %663 = shalt.err (!%p660_p0)
}
 0x501   :  { %s664_s23 = scalar_lea.hbm %s826_s7, 32 }
 0x502   :  { %p665_p1 = scmp.ne.s32.totalorder %s826_s7, %s664_s23  ;;  %p668_p2 = scmp.lt.u32.totalorder %s664_s23, %s826_s7 }
 0x504   :  { %p670_p3 = pnand %p668_p2, %p665_p1 }
 0x506   :  { %673 = shalt.err (!%p670_p3)
}
 0x507   :  { %391 = dma.vmem_to_hbm [thread:$0]  %s389_s19, 32, %s826_s7, [#allocation5]  }
 0x508   :  { %678 = dma.done.wait [#allocation5], 32  }
 0x509   :  { %679 = vsyncadd [#allocation5], 4294967264 }
 0x50a   :  { %395 = vsyncpa [#allocation4], 1 }
 0x50b   :  { %396 = vsyncpa [#allocation7], 1 }
 0x50c   :  { %397 = vsyncpa [#allocation5], 1 }

</bundles_post_ra>
